<compile_context>
chip_gen: v5e
topology: v5e:2x2
jax: 0.10.0
libtpu: 0.0.40
codegen_flags: <defaults>
</compile_context>

<pallas_src>
import math

import numpy as np
import jax
import jax.numpy as jnp
from jax.experimental import pallas as pl
from jax.experimental.pallas import tpu as pltpu


def gate_kernel(a_ref, b_ref, w_ref, bias_ref, o_ref):
    # a_ref/b_ref/o_ref: (tm, D) in the input dtype.
    # w_ref:             (2, D) f32 resident weight tile (row 0=W_A, 1=W_B).
    # bias_ref:          (1,) f32 scalar in SMEM.
    a = a_ref[...]
    b = b_ref[...]
    wa = w_ref[0:1, :]                      # (1, D) f32, broadcasts over rows
    wb = w_ref[1:2, :]

    # gate logit = A @ W_A^T + B @ W_B^T + bias, as a fused multiply-add
    # (promoted to f32 by the f32 weights) plus one cross-lane reduction.
    logit = jnp.sum(a * wa + b * wb, axis=-1, keepdims=True,
                    dtype=jnp.float32) + bias_ref[0]            # (tm, 1) f32
    gate = jax.nn.sigmoid(logit)                                # (tm, 1) f32

    # gate*A + (1-gate)*B  ==  B + gate*(A-B); blend with the f32 gate and
    # cast once on store.
    o_ref[...] = (b + gate * (a - b)).astype(o_ref.dtype)


def _tpu_generation():
    """Best-effort TPU generation detection (5 / 6 / 7), None if unknown."""
    try:
        kind = jax.devices()[0].device_kind.lower()
    except Exception:
        return None
    for g in (7, 6, 5):
        if str(g) in kind:
            return g
    return None


def _choose_tm(M, D, itemsize, target_bytes, min_blocks):
    """Row tile so each streamed (tm, D) buffer is ~target_bytes.

    If min_blocks > 1 (v7x megacore), also cap tm so the grid has at least
    min_blocks steps and both TensorCores get work.
    """
    tm = max(8, int(target_bytes) // max(D * itemsize, 1))
    tm = (tm // 8) * 8                           # sublane multiple
    if min_blocks > 1:
        cap = -(-M // min_blocks)                # ceil(M / min_blocks)
        cap = max(8, -(-cap // 8) * 8)           # round up to sublane multiple
        tm = min(tm, cap)
    if tm >= M:
        return M                                 # single full-extent block
    return tm


def gate_mechanism(input_A, input_B, weight, bias, *, tm=None):
    """weight: (1, 2*D), bias: (1,).  input_A/input_B: (..., D)."""
    assert input_A.shape == input_B.shape
    *lead, D = input_A.shape
    M = int(np.prod(lead)) if lead else 1

    a2 = input_A.reshape(M, D)
    b2 = input_B.reshape(M, D)
    w2 = weight.reshape(2, D).astype(jnp.float32)   # row 0 = W_A, row 1 = W_B
    bias1 = bias.reshape(1).astype(jnp.float32)     # (1,) scalar -> SMEM

    # Per-generation tile / VMEM / buffering settings.
    gen = _tpu_generation()
    if gen == 7:
        target_bytes, vmem_limit, min_blocks, n_buf = 4 << 20, 48 << 20, 4, 3
    elif gen == 6:
        target_bytes, vmem_limit, min_blocks, n_buf = 4 << 20, 64 << 20, 1, 2
    elif gen == 5:
        target_bytes, vmem_limit, min_blocks, n_buf = 2 << 20, 32 << 20, 1, 2
    else:
        target_bytes, vmem_limit, min_blocks, n_buf = 2 << 20, None, 1, 2

    itemsize = jnp.dtype(input_A.dtype).itemsize
    if tm is None:
        tm = _choose_tm(M, D, itemsize, target_bytes, min_blocks)

    grid_m = -(-M // tm)   # ceil-div; ragged last block is masked by Pallas

    # Streamed row specs for A / B (deeper buffering on v7x's fast HBM).
    ab_kwargs = {}
    if n_buf != 2:
        ab_kwargs["pipeline_mode"] = pl.Buffered(n_buf)
    a_spec = pl.BlockSpec((tm, D), lambda i: (i, 0), **ab_kwargs)
    b_spec = pl.BlockSpec((tm, D), lambda i: (i, 0), **ab_kwargs)

    cp_kwargs = dict(dimension_semantics=("parallel",))
    if vmem_limit is not None:
        cp_kwargs["vmem_limit_bytes"] = vmem_limit

    cost = pl.CostEstimate(
        flops=7 * M * D,                                  # logit FMAs + blend
        transcendentals=M,                                # sigmoid per row
        bytes_accessed=3 * M * D * itemsize + 2 * D * 4 + 4)

    out = pl.pallas_call(
        gate_kernel,
        out_shape=jax.ShapeDtypeStruct((M, D), input_A.dtype),
        grid_spec=pltpu.PrefetchScalarGridSpec(
            num_scalar_prefetch=0,
            grid=(grid_m,),
            in_specs=[
                a_spec,                                     # A rows (streamed)
                b_spec,                                     # B rows (streamed)
                pl.BlockSpec((2, D), lambda i: (0, 0)),     # W (resident)
                pl.BlockSpec(memory_space=pltpu.MemorySpace.SMEM),  # bias
            ],
            out_specs=pl.BlockSpec((tm, D), lambda i: (i, 0)),
        ),
        compiler_params=pltpu.CompilerParams(**cp_kwargs),
        cost_estimate=cost,
    )(a2, b2, w2, bias1)

    return out.reshape(*lead, D)


def gate_mechanism_ref(input_A, input_B, weight, bias):
    combined = jnp.concatenate([input_A, input_B], axis=-1)
    logit = combined @ weight.T + bias            # (..., 1)
    gate = jax.nn.sigmoid(logit)
    return gate * input_A + (1.0 - gate) * input_B


if __name__ == "__main__":
    # Small deterministic example: batch=2, seq=8, hidden=32
    batch, seq, hidden = 2, 8, 32
    key = jax.random.PRNGKey(0)
    k_a, k_b, k_w, k_bias = jax.random.split(key, 4)

    input_A = jax.random.normal(k_a, (batch, seq, hidden), dtype=jnp.float32)
    input_B = jax.random.normal(k_b, (batch, seq, hidden), dtype=jnp.float32)

    # nn.Linear(input_dim*2, 1): weight (1, 2*hidden), bias (1,)
    bound = 1.0 / math.sqrt(2 * hidden)
    weight = jax.random.uniform(k_w, (1, 2 * hidden), dtype=jnp.float32,
                                minval=-bound, maxval=bound)
    bias = jax.random.uniform(k_bias, (1,), dtype=jnp.float32,
                              minval=-bound, maxval=bound)

    out = gate_mechanism(input_A, input_B, weight, bias)
    out = jax.block_until_ready(out)

    ref = gate_mechanism_ref(input_A, input_B, weight, bias)
    np.testing.assert_allclose(np.asarray(out), np.asarray(ref),
                               rtol=1e-5, atol=1e-5)

    print("KERNEL_OK")
</pallas_src>

<mosaic_0001>
module attributes {stable_mosaic.version = 11 : i64} {
  func.func @gate_kernel(%arg0: i32, %arg1: memref<16x32xf32, #tpu.memory_space<vmem>>, %arg2: memref<16x32xf32, #tpu.memory_space<vmem>>, %arg3: memref<2x32xf32, #tpu.memory_space<vmem>>, %arg4: memref<1xf32, #tpu.memory_space<smem>>, %arg5: memref<16x32xf32, #tpu.memory_space<vmem>>) attributes {dimension_semantics = [#tpu.dimension_semantics<parallel>], iteration_bounds = array<i64: 1>, scalar_prefetch = 0 : i64, scratch_operands = 0 : i64, tpu.core_type = #tpu.core_type<tc>, window_params = [{transform_indices = @transform_0, window_bounds = array<i64: 16, 32>}, {transform_indices = @transform_1, window_bounds = array<i64: 16, 32>}, {pipeline_mode = #tpu.pipeline_mode<synchronous>, transform_indices = @transform_2, window_bounds = array<i64: 2, 32>}, {transform_indices = @transform_3, window_bounds = array<i64: 1>}, {transform_indices = @transform_4, window_bounds = array<i64: 16, 32>}]} {
    %c0 = arith.constant 0 : index
    %c0_0 = arith.constant 0 : index
    %0 = vector.load %arg1[%c0, %c0_0] : memref<16x32xf32, #tpu.memory_space<vmem>>, vector<16x32xf32>
    %c0_1 = arith.constant 0 : index
    %c0_2 = arith.constant 0 : index
    %1 = vector.load %arg2[%c0_1, %c0_2] : memref<16x32xf32, #tpu.memory_space<vmem>>, vector<16x32xf32>
    %c0_3 = arith.constant 0 : index
    %c0_4 = arith.constant 0 : index
    %2 = vector.load %arg3[%c0_3, %c0_4] : memref<2x32xf32, #tpu.memory_space<vmem>>, vector<1x32xf32>
    %c1 = arith.constant 1 : index
    %c0_5 = arith.constant 0 : index
    %3 = vector.load %arg3[%c1, %c0_5] : memref<2x32xf32, #tpu.memory_space<vmem>>, vector<1x32xf32>
    %4 = vector.broadcast %2 : vector<1x32xf32> to vector<16x32xf32>
    %5 = arith.mulf %0, %4 : vector<16x32xf32>
    %6 = vector.broadcast %3 : vector<1x32xf32> to vector<16x32xf32>
    %7 = arith.mulf %1, %6 : vector<16x32xf32>
    %8 = arith.addf %5, %7 : vector<16x32xf32>
    %cst = arith.constant dense<0.000000e+00> : vector<16xf32>
    %9 = vector.multi_reduction <add>, %8, %cst [1] : vector<16x32xf32> to vector<16xf32>
    %10 = vector.shape_cast %9 : vector<16xf32> to vector<16x1xf32>
    %c0_6 = arith.constant 0 : index
    %11 = memref.load %arg4[%c0_6] : memref<1xf32, #tpu.memory_space<smem>>
    %12 = vector.broadcast %11 : f32 to vector<16x1xf32>
    %13 = arith.addf %10, %12 : vector<16x1xf32>
    %14 = arith.negf %13 : vector<16x1xf32>
    %15 = math.exp %14 : vector<16x1xf32>
    %cst_7 = arith.constant 1.000000e+00 : f32
    %16 = vector.broadcast %cst_7 : f32 to vector<16x1xf32>
    %17 = arith.addf %16, %15 : vector<16x1xf32>
    %18 = arith.divf %16, %17 : vector<16x1xf32>
    %19 = arith.subf %0, %1 : vector<16x32xf32>
    %20 = vector.broadcast %18 : vector<16x1xf32> to vector<16x32xf32>
    %21 = arith.mulf %20, %19 : vector<16x32xf32>
    %22 = arith.addf %1, %21 : vector<16x32xf32>
    %c0_8 = arith.constant 0 : index
    %c0_9 = arith.constant 0 : index
    %23 = vector.load %arg5[%c0_8, %c0_9] : memref<16x32xf32, #tpu.memory_space<vmem>>, vector<16x32xf32>
    tpu.vector_store %arg5[%c0_8, %c0_9], %22 {strides = array<i32>} : memref<16x32xf32, #tpu.memory_space<vmem>>, vector<16x32xf32>,
    return
  }
  func.func @transform_0(%arg0: i32) -> (i32, i32) {
    %c0_i32 = arith.constant 0 : i32
    %c0_i32_0 = arith.constant 0 : i32
    return %arg0, %c0_i32 : i32, i32
  }
  func.func @transform_1(%arg0: i32) -> (i32, i32) {
    %c0_i32 = arith.constant 0 : i32
    %c0_i32_0 = arith.constant 0 : i32
    return %arg0, %c0_i32 : i32, i32
  }
  func.func @transform_2(%arg0: i32) -> (i32, i32) {
    %c0_i32 = arith.constant 0 : i32
    %c0_i32_0 = arith.constant 0 : i32
    %c0_i32_1 = arith.constant 0 : i32
    return %c0_i32, %c0_i32_0 : i32, i32
  }
  func.func @transform_3(%arg0: i32) -> i32 {
    %c0_i32 = arith.constant 0 : i32
    %c0_i32_0 = arith.constant 0 : i32
    return %c0_i32 : i32
  }
  func.func @transform_4(%arg0: i32) -> (i32, i32) {
    %c0_i32 = arith.constant 0 : i32
    %c0_i32_0 = arith.constant 0 : i32
    return %arg0, %c0_i32 : i32, i32
  }
}

</mosaic_0001>

<bundles_post_ra>
// kernel: tpu_custom_call.1
= control target key start
LH: loop header
LB: loop body
LE: loop exit
PB: predicated region body
PF: predicated region fallthrough
CT: control target
= control target key end

     0   :  { %10 = vsyncpa [#allocation4], 0  ;;  %s307_s0 = inlined_call_operand.hbm [shape: f32[16,32], index: 0, kind: input, shape index: {}]   ;;  %s308_s1 = inlined_call_operand.hbm [shape: f32[16,32], index: 1, kind: input, shape index: {}]   ;;  %s309_s2 = inlined_call_operand.vmem [shape: f32[2,32], index: 2, kind: input, shape index: {}]   ;;  %s310_s3 = inlined_call_operand.<no memory space> [shape: f32[1], index: 3, kind: input, shape index: {}]   ;;  %s311_s4 = inlined_call_operand.hbm [shape: f32[16,32], index: 4, kind: output, shape index: {}]  }
   0x1   :  { %11 = vsyncpa [#allocation7], 0 }
   0x2   :  { %12 = vsyncpa [#allocation5], 0  ;;  %s17_s17 = sshll.u32 %s307_s0, 4  ;;  %s237_s18 = smov [#allocation3]   ;;  %s18_s17 = int_to_ptr.hbm [resolvable:$true] %s17_s17 }
   0x3   :  { %s19_s19 = sshll.u32 %s237_s18, 4  ;;  %s30_s22 = sshll.u32 %s308_s1, 4  ;;  %s20_s19 = int_to_ptr.vmem [resolvable:$true] %s19_s19  ;;  %s31_s22 = int_to_ptr.hbm [resolvable:$true] %s30_s22 }
   0x4   :  { %s238_s23 = smov 128   ;;  %s239_s24 = smov 8  }
   0x5   :  { %25 = dma.hbm_to_vmem [thread:$0]  %s18_s17, 256, %s20_s19, [#allocation4], %s238_s23, %s238_s23, %s239_s24  }
   0x6   :  { %s240_s25 = smov [#allocation6]  }
   0x7   :  { %s32_s26 = sshll.u32 %s240_s25, 4  ;;  %s33_s26 = int_to_ptr.vmem [resolvable:$true] %s32_s26 }
   0x8   :  { %38 = dma.hbm_to_vmem [thread:$0]  %s31_s22, 256, %s33_s26, [#allocation7], %s238_s23, %s238_s23, %s239_s24  }
   0x9   :  { %231 = dma.done.wait [#allocation4], 256  }
   0xa   :  { %232 = vsyncadd [#allocation4], 4294967040 }
   0xb   :  { %233 = dma.done.wait [#allocation7], 256  }
   0xc   :  { %234 = vsyncadd [#allocation7], 4294967040  ;;  %v51_v0 = vld [vmem:[#allocation3] sm:$0xff]  ;;  %v53_v1 = vld [vmem:[#allocation6] sm:$0xff]  ;;  %vm65_vm0 = vcmask 261120   ;;  %v73_v14 = vstv %s310_s3  ;;  %s241_s3 = smov [#allocation8]  }
   0xd   :  { %v149_v2 = vld [vmem:[%s309_s2] ss:$0 sm:$0xff]  ;;  %v150_v3 = vld [vmem:[%s309_s2 + $0x1] ss:$0 sm:$0xff]  ;;  %v285_v4 = vld [vmem:[#allocation3 + $0x8] sm:$0xff]  ;;  %v114_v31 = vsub.f32 %v51_v0, %v53_v1  ;;  %s126_s30 = sshll.u32 %s241_s3, 4  ;;  %s127_s30 = int_to_ptr.vmem [resolvable:$true] %s126_s30 }
   0xe   :  { %v287_v5 = vld [vmem:[#allocation6 + $0x8] sm:$0xff]  ;;  %v58_v6 = vmul.f32 %v149_v2, %v51_v0  ;;  %v61_v7 = vmul.f32 %v150_v3, %v53_v1  ;;  %v59_v9 = vmul.f32 %v149_v2, %v285_v4  ;;  %s128_s7 = sshll.u32 %s311_s4, 4  ;;  %s129_s7 = int_to_ptr.hbm [resolvable:$true] %s128_s7 }
   0xf   :  { %v62_v10 = vmul.f32 %v150_v3, %v287_v5  ;;  %v115_v44 = vsub.f32 %v285_v4, %v287_v5 }
  0x10   :  { %v63_v8 = vadd.f32 %v61_v7, %v58_v6 }
  0x11   :  { %v64_v12 = vadd.f32 %v62_v10, %v59_v9 }
  0x12   :  { %v66_v11 = vsel %vm65_vm0, %v63_v8, 0.0 }
  0x13   :  { %67 = vadd.xlane.f32.xlu0 %v66_v11  ;;  %v69_v13 = vsel %vm65_vm0, %v64_v12, 0.0 }
  0x1b   :  { %70 = vadd.xlane.f32.xlu0 %v69_v13 }
  0x86   :  { %v68_v15 = vpop.xlane.xlu0 %67 }
  0x87   :  { %v74_v16 = vadd.f32 %v73_v14, %v68_v15 }
  0x89   :  { %v142_v17 = vmul.f32 -1.442695, %v74_v16 }
  0x8b   :  { %151 = vpow2.f32 %v142_v17 }
  0x8e   :  { %v71_v18 = vpop.xlane.xlu0 %70 }
  0x8f   :  { %v75_v19 = vadd.f32 %v73_v14, %v71_v18 }
  0x91   :  { %v152_v20 = vpop.eup %151  ;;  %v143_v21 = vmul.f32 -1.442695, %v75_v19 }
  0x92   :  { %v82_v22 = vadd.f32 1.0, %v152_v20 }
  0x93   :  { %153 = vpow2.f32 %v143_v21 }
  0x94   :  { %155 = vrcp.f32 %v82_v22  ;;  %v95_v28 = vand.u32 2147483648, %v82_v22  ;;  %v93_v30 = vand.u32 2147483647, %v82_v22  ;;  %vm89_vm2 = vweird.f32 %v82_v22 }
  0x96   :  { %v96_v34 = vor.u32 1.1754944e-38, %v95_v28  ;;  %vm94_vm4 = vcmp.eq.f32.partialorder %v93_v30, 8.507059e+37 }
  0x99   :  { %v154_v23 = vpop.eup %153 }
  0x9a   :  { %v156_v24 = vpop.eup %155  ;;  %v83_v25 = vadd.f32 1.0, %v154_v23 }
  0x9b   :  { %v85_v26 = vmul.f32 %v156_v24, %v82_v22  ;;  %vm90_vm1 = vweird.f32 %v156_v24 }
  0x9c   :  { %157 = vrcp.f32 %v83_v25  ;;  %vm91_vm3 = vmor %vm89_vm2, %vm90_vm1  ;;  %v110_v40 = vand.u32 2147483648, %v83_v25  ;;  %v108_v42 = vand.u32 2147483647, %v83_v25  ;;  %vm104_vm6 = vweird.f32 %v83_v25 }
  0x9d   :  { %v86_v27 = vsub.f32 1.0, %v85_v26 }
  0x9e   :  { %v111_v46 = vor.u32 1.1754944e-38, %v110_v40  ;;  %vm109_vm8 = vcmp.eq.f32.partialorder %v108_v42, 8.507059e+37 }
  0x9f   :  { %v87_v29 = vmul.f32 %v156_v24, %v86_v27 }
  0xa1   :  { %v88_v32 = vadd.f32 %v156_v24, %v87_v29 }
  0xa2   :  { %v158_v33 = vpop.eup %157 }
  0xa3   :  { %v100_v35 = vmul.f32 %v158_v33, %v83_v25  ;;  %v92_v36 = vsel %vm91_vm3, %v156_v24, %v88_v32  ;;  %vm105_vm5 = vweird.f32 %v158_v33 }
  0xa4   :  { %v97_v37 = vsel %vm94_vm4, %v96_v34, %v92_v36  ;;  %vm106_vm7 = vmor %vm104_vm6, %vm105_vm5 }
  0xa5   :  { %v101_v38 = vsub.f32 1.0, %v100_v35  ;;  %v116_v39 = vmul.f32 %v114_v31, %v97_v37 }
  0xa7   :  { %v102_v41 = vmul.f32 %v158_v33, %v101_v38  ;;  %v118_v43 = vadd.f32 %v116_v39, %v53_v1 }
  0xa9   :  { %v103_v45 = vadd.f32 %v158_v33, %v102_v41  ;;  %120 = vst.msk [vmem:[#allocation8] sm:$0xff] %vm65_vm0, %v118_v43 }
  0xab   :  { %v107_v47 = vsel %vm106_vm7, %v158_v33, %v103_v45 }
  0xac   :  { %v112_v48 = vsel %vm109_vm8, %v111_v46, %v107_v47 }
  0xad   :  { %v117_v49 = vmul.f32 %v115_v44, %v112_v48 }
  0xaf   :  { %v119_v50 = vadd.f32 %v117_v49, %v287_v5 }
  0xb1   :  { %121 = vst.msk [vmem:[#allocation8 + $0x8] sm:$0xff] %vm65_vm0, %v119_v50 }
  0xb2   :  { %134 = dma.vmem_to_hbm [thread:$0]  %s127_s30, 256, %s129_s7, [#allocation5], %s238_s23, %s238_s23, %s239_s24  }
  0xb3   :  { %235 = dma.done.wait [#allocation5], 256  }
  0xb4   :  { %236 = vsyncadd [#allocation5], 4294967040 }
  0xb5   :  { %139 = vsyncpa [#allocation4], 1 }
  0xb6   :  { %140 = vsyncpa [#allocation7], 1 }
  0xb7   :  { %141 = vsyncpa [#allocation5], 1 }

</bundles_post_ra>
